<compile_context>
chip_gen: v6e
topology: v6e:2x2x1
jax: 0.10.0
libtpu: 0.0.40
codegen_flags: <defaults>
</compile_context>

<pallas_src>
import numpy as np
import jax
import jax.numpy as jnp
from jax.experimental import pallas as pl
from jax.experimental.pallas import tpu as pltpu


def _round_up(x, m):
    return ((x + m - 1) // m) * m


def _make_rpb_kernel(k_chunk):
    def _rpb_kernel(idx_ref, table_t_ref, out_ref):
        # idx_ref:     (1, TILE_NN)      int32  (flattened index, this NN tile)
        # table_t_ref: (H_pad, R_pad)    f32    (transposed, zero-padded table)
        # out_ref:     (H_pad, TILE_NN)  f32    (bias already in (H, NN) layout)
        idx = idx_ref[...]                                   # (1, TILE_NN)
        r_pad = table_t_ref.shape[1]
        num_k = r_pad // k_chunk

        # Loop-invariant column iota; the == compare broadcasts across lanes so the
        # one-hot build per chunk is one compare + one cast (hoisted out of the loop).
        k_iota = jax.lax.broadcasted_iota(jnp.int32, (k_chunk, 1), 0)

        def body(k, acc):
            base = pl.multiple_of(k * k_chunk, k_chunk)
            onehot = ((idx - base) == k_iota).astype(table_t_ref.dtype)   # (K, TILE)
            tab = table_t_ref[:, pl.ds(base, k_chunk)]                    # (H_pad, K)
            return acc + jnp.dot(tab, onehot, preferred_element_type=jnp.float32)

        acc = jax.lax.fori_loop(
            0, num_k, body,
            jnp.zeros(out_ref.shape, jnp.float32),
            unroll=(num_k <= 8),
        )
        out_ref[...] = acc.astype(out_ref.dtype)

    return _rpb_kernel


def relative_position_bias(table, rel_pos_index, *, max_tile_nn=4096, k_chunk=256):
    """table: (R, H) float32, rel_pos_index: (N, N) int -> (H, N, N) float32."""
    n = rel_pos_index.shape[0]
    nn = n * n
    r, h = table.shape

    h_pad = _round_up(h, 8)          # full sublanes: unmasked MXU results / stores
    r_pad = _round_up(r, k_chunk)    # clean MXU K dim, multiple of the K chunk

    # ---- adaptive NN tile --------------------------------------------------
    nn128 = _round_up(nn, 128)
    tile_nn = min(_round_up(max_tile_nn, 128), nn128)

    def step_bytes(t):
        return (2 * (t * 4 + h_pad * t * 4)   # double-buffered idx + out tiles
                + 2 * h_pad * r_pad * 4       # resident table (2 pipeline buffers)
                + k_chunk * t * 4             # one-hot K chunk
                + h_pad * t * 4)              # f32 accumulator

    budget = 24 << 20                          # stays well inside v7x's 64 MiB VMEM
    while tile_nn > 256 and step_bytes(tile_nn) > budget:
        tile_nn -= 128
    # Keep >= 2 grid steps when NN is big enough, so the "parallel" axis can shard
    # across v7x's two TensorCores (no-op on single-TC v5e/v6e).
    if nn128 >= 2048 and tile_nn >= nn128:
        tile_nn = _round_up((nn128 + 1) // 2, 128)

    nn_pad = _round_up(nn, tile_nn)
    grid = (nn_pad // tile_nn,)

    # ---- padded operands ---------------------------------------------------
    table_t = jnp.zeros((h_pad, r_pad), table.dtype).at[:h, :r].set(table.T)
    # Padded NN entries index past the table (>= r_pad) -> all-zero one-hot columns.
    idx = jnp.full((1, nn_pad), r_pad, dtype=jnp.int32)
    idx = idx.at[0, :nn].set(rel_pos_index.reshape(-1).astype(jnp.int32))

    vmem_need = step_bytes(tile_nn)
    vmem_limit = int(min(max(vmem_need * 3 // 2 + (2 << 20), 8 << 20), 40 << 20))

    out = pl.pallas_call(
        _make_rpb_kernel(k_chunk),
        out_shape=jax.ShapeDtypeStruct((h_pad, nn_pad), table.dtype),
        grid=grid,
        in_specs=[
            pl.BlockSpec((1, tile_nn), lambda i: (0, i)),   # idx tile
            pl.BlockSpec((h_pad, r_pad), lambda i: (0, 0)),  # table stays resident
        ],
        out_specs=pl.BlockSpec((h_pad, tile_nn), lambda i: (0, i)),
        compiler_params=pltpu.CompilerParams(
            dimension_semantics=("parallel",),
            vmem_limit_bytes=vmem_limit,
        ),
    )(idx, table_t)

    # Output is already (H_pad, NN_pad); drop padding and reshape.
    return out[:h, :nn].reshape(h, n, n)


def build_relative_position_index(window_size):
    """Replicates the index construction from RelativePositionBias.__init__."""
    wh, ww = window_size
    num_relative_distance = (2 * wh - 1) * (2 * ww - 1) + 3
    coords_h = np.arange(wh)
    coords_w = np.arange(ww)
    coords = np.stack(np.meshgrid(coords_h, coords_w, indexing="ij"))  # (2, Wh, Ww)
    coords_flatten = coords.reshape(2, -1)                             # (2, Wh*Ww)
    relative_coords = coords_flatten[:, :, None] - coords_flatten[:, None, :]
    relative_coords = relative_coords.transpose(1, 2, 0).copy()        # (Wh*Ww, Wh*Ww, 2)
    relative_coords[:, :, 0] += wh - 1
    relative_coords[:, :, 1] += ww - 1
    relative_coords[:, :, 0] *= 2 * ww - 1
    n = wh * ww + 1
    rpi = np.zeros((n, n), dtype=np.int64)
    rpi[1:, 1:] = relative_coords.sum(-1)
    rpi[0, 0:] = num_relative_distance - 3
    rpi[0:, 0] = num_relative_distance - 2
    rpi[0, 0] = num_relative_distance - 1
    return rpi, num_relative_distance


if __name__ == "__main__":
    # Small shapes: window_size = (4, 4), num_heads = 4
    window_size = (4, 4)
    num_heads = 4

    rpi_np, num_relative_distance = build_relative_position_index(window_size)
    rel_pos_index = jnp.asarray(rpi_np, dtype=jnp.int32)

    # Deterministic synthetic parameter (PyTorch init is zeros; use random
    # values so the gather is actually exercised).
    key = jax.random.PRNGKey(0)
    table = jax.random.normal(
        key, (num_relative_distance, num_heads), dtype=jnp.float32
    )

    out = relative_position_bias(table, rel_pos_index)
    out = jax.block_until_ready(out)

    # Pure-JAX reference of the PyTorch forward
    n = window_size[0] * window_size[1] + 1
    ref = jnp.transpose(
        table[rel_pos_index.reshape(-1)].reshape(n, n, num_heads), (2, 0, 1)
    )
    assert out.shape == (num_heads, n, n)
    np.testing.assert_allclose(np.asarray(out), np.asarray(ref), rtol=1e-6, atol=1e-6)

    print("KERNEL_OK")
</pallas_src>

<mosaic_0001>
module attributes {stable_mosaic.version = 11 : i64} {
  func.func @_rpb_kernel(%arg0: i32, %arg1: memref<1x384xi32, #tpu.memory_space<vmem>>, %arg2: memref<8x256xf32, #tpu.memory_space<vmem>>, %arg3: memref<8x384xf32, #tpu.memory_space<vmem>>) attributes {dimension_semantics = [#tpu.dimension_semantics<parallel>], iteration_bounds = array<i64: 1>, scalar_prefetch = 0 : i64, scratch_operands = 0 : i64, tpu.core_type = #tpu.core_type<tc>, window_params = [{transform_indices = @transform_0, window_bounds = array<i64: 1, 384>}, {pipeline_mode = #tpu.pipeline_mode<synchronous>, transform_indices = @transform_1, window_bounds = array<i64: 8, 256>}, {transform_indices = @transform_2, window_bounds = array<i64: 8, 384>}]} {
    %c0 = arith.constant 0 : index
    %c0_0 = arith.constant 0 : index
    %0 = vector.load %arg1[%c0, %c0_0] : memref<1x384xi32, #tpu.memory_space<vmem>>, vector<1x384xi32>
    %1 = tpu.iota {dimensions = array<i32: 0>} : vector<256x1xi32>
    %cst = arith.constant 0.000000e+00 : f32
    %2 = vector.broadcast %cst : f32 to vector<8x384xf32>
    %c0_i32 = arith.constant 0 : i32
    %c256_i32 = arith.constant 256 : i32
    %3 = arith.muli %c0_i32, %c256_i32 : i32
    %4 = tpu.assume_multiple %3, 256 : i32
    %5 = vector.broadcast %4 : i32 to vector<1x384xi32>
    %6 = arith.subi %0, %5 : vector<1x384xi32>
    %7 = vector.broadcast %6 : vector<1x384xi32> to vector<256x384xi32>
    %8 = vector.broadcast %1 : vector<256x1xi32> to vector<256x384xi32>
    %9 = arith.cmpi eq, %7, %8 : vector<256x384xi32>
    %10 = arith.extui %9 : vector<256x384xi1> to vector<256x384xi32>
    %11 = arith.sitofp %10 : vector<256x384xi32> to vector<256x384xf32>
    %c0_1 = arith.constant 0 : index
    %12 = arith.index_cast %4 : i32 to index
    %13 = vector.load %arg2[%c0_1, %12] : memref<8x256xf32, #tpu.memory_space<vmem>>, vector<8x256xf32>
    %cst_2 = arith.constant dense<0.000000e+00> : vector<8x384xf32>
    %14 = tpu.matmul %13, %11, %cst_2 {dimension_numbers = #tpu.dot_dimension_numbers<[1], [0], [0], [1], [0, 0, 1, 1], [], []>} : vector<8x256xf32>, vector<256x384xf32>, vector<8x384xf32> -> vector<8x384xf32>
    %15 = arith.addf %2, %14 : vector<8x384xf32>
    %c1_i32 = arith.constant 1 : i32
    %c0_3 = arith.constant 0 : index
    %c0_4 = arith.constant 0 : index
    %16 = vector.load %arg3[%c0_3, %c0_4] : memref<8x384xf32, #tpu.memory_space<vmem>>, vector<8x384xf32>
    tpu.vector_store %arg3[%c0_3, %c0_4], %15 {strides = array<i32>} : memref<8x384xf32, #tpu.memory_space<vmem>>, vector<8x384xf32>,
    return
  }
  func.func @transform_0(%arg0: i32) -> (i32, i32) {
    %c0_i32 = arith.constant 0 : i32
    %c0_i32_0 = arith.constant 0 : i32
    return %c0_i32, %arg0 : i32, i32
  }
  func.func @transform_1(%arg0: i32) -> (i32, i32) {
    %c0_i32 = arith.constant 0 : i32
    %c0_i32_0 = arith.constant 0 : i32
    %c0_i32_1 = arith.constant 0 : i32
    return %c0_i32, %c0_i32_0 : i32, i32
  }
  func.func @transform_2(%arg0: i32) -> (i32, i32) {
    %c0_i32 = arith.constant 0 : i32
    %c0_i32_0 = arith.constant 0 : i32
    return %c0_i32, %arg0 : i32, i32
  }
}

</mosaic_0001>

<bundles_post_ra>
// kernel: tpu_custom_call.1
= control target key start
LH: loop header
LB: loop body
LE: loop exit
PB: predicated region body
PF: predicated region fallthrough
CT: control target
= control target key end

     0   :  { %7 = vsyncpa [#allocation3], 0  ;;  %s1244_s0 = inlined_call_operand.hbm [shape: s32[1,384], index: 0, kind: input, shape index: {}]   ;;  %s1245_s1 = inlined_call_operand.hbm [shape: f32[8,256], index: 1, kind: input, shape index: {}]   ;;  %s1246_s2 = inlined_call_operand.hbm [shape: f32[8,384], index: 2, kind: output, shape index: {}]  }
   0x1   :  { %8 = vsyncpa [#allocation6], 0 }
   0x2   :  { %9 = vsyncpa [#allocation4], 0  ;;  %s831_s9 = smov [#allocation2]   ;;  %s832_s11 = smov [#allocation5]  }
   0x3   :  { %s16_s10 = sshll.u32 %s831_s9, 4  ;;  %s26_s12 = sshll.u32 %s832_s11, 4  ;;  %s17_s10 = int_to_ptr.vmem [resolvable:$true] %s16_s10  ;;  %s27_s12 = int_to_ptr.vmem [resolvable:$true] %s26_s12 }
   0x4   :  { %s773_s13 = scalar_lea.vmem %s17_s10, 48  ;;  %s777_s14 = scalar_lea.vmem %s17_s10, 64 }
   0x5   :  { %p774_p0 = scmp.ne.s32.totalorder %s17_s10, %s773_s13  ;;  %p778_p1 = scmp.lt.s32.totalorder %s17_s10, %s17_s10 }
   0x6   :  { %p779_p2 = scmp.lt.s32.totalorder %s777_s14, %s773_s13 }
   0x8   :  { %p780_p3 = por %p779_p2, %p778_p1 }
   0xa   :  { %p781_p4 = pnand %p780_p3, %p774_p0 }
   0xc   :  { %784 = shalt.err (!%p781_p4)
}
   0xd   :  { %19 = dma.hbm_to_vmem [thread:$0]  %s1244_s0, 48, %s17_s10, [#allocation3]  }
   0xe   :  { %s793_s17 = scalar_lea.vmem %s27_s12, 256  ;;  %p798_p6 = scmp.lt.s32.totalorder %s27_s12, %s27_s12 }
   0xf   :  { %p794_p5 = scmp.ne.s32.totalorder %s27_s12, %s793_s17  ;;  %p799_p7 = scmp.lt.s32.totalorder %s793_s17, %s793_s17 }
  0x11   :  { %p800_p8 = por %p799_p7, %p798_p6 }
  0x13   :  { %p801_p9 = pnand %p800_p8, %p794_p5 }
  0x15   :  { %804 = shalt.err (!%p801_p9)
}
  0x16   :  { %29 = dma.hbm_to_vmem [thread:$0]  %s1245_s1, 256, %s27_s12, [#allocation6]  }
  0x17   :  { %825 = dma.done.wait [#allocation3], 48  }
  0x18   :  { %826 = vsyncadd [#allocation3], 4294967248 }
  0x19   :  { %827 = dma.done.wait [#allocation6], 256  }
  0x1a   :  { %828 = vsyncadd [#allocation6], 4294967040  ;;  %v37_v0 = vlaneseq  ;;  %v36_v6 = vld [vmem:[#allocation2] sm:$0x7]  ;;  %v373_v10 = vld [vmem:[#allocation5 + $0x8] sm:$0xff]  ;;  %v833_v13 = vmov 1.0  }
  0x1b   :  { %509 = vmatprep.mubr.f32.mxu1 %v373_v10  ;;  %438 = vmatprep.mubr.f32.mxu0 %v373_v10  ;;  %v372_v42 = vld [vmem:[#allocation5] sm:$0xff]  ;;  %s834_s0 = smov [#allocation7]  }
  0x1c   :  { %v856_v1 = vshrl.u32 %v37_v0, 7  ;;  %s524_s1 = sshll.u32 %s834_s0, 4  ;;  %s525_s1 = int_to_ptr.vmem [resolvable:$true] %s524_s1 }
  0x1d   :  { %s805_s20 = scalar_lea.vmem %s525_s1, 384  ;;  %p810_p11 = scmp.lt.s32.totalorder %s525_s1, %s525_s1 }
  0x1e   :  { %v74_v2 = vsub.s32 0, %v856_v1  ;;  %v78_v3 = vsub.s32 1, %v856_v1  ;;  %v53_v4 = vadd.s32 120, %v856_v1  ;;  %v52_v5 = vadd.s32 112, %v856_v1  ;;  %p806_p10 = scmp.ne.s32.totalorder %s525_s1, %s805_s20  ;;  %p811_p12 = scmp.lt.s32.totalorder %s805_s20, %s805_s20 }
  0x1f   :  { %v867_v9 = vadd.s32 104, %v856_v1  ;;  %v82_v11 = vsub.s32 2, %v856_v1  ;;  %v874_v12 = vadd.s32 96, %v856_v1  ;;  %v882_v14 = vadd.s32 88, %v856_v1 }
  0x20   :  { %v862_v7 = vrot.slane %v36_v6, %v74_v2  ;;  %v864_v8 = vrot.slane %v36_v6, %v78_v3  ;;  %v890_v16 = vadd.s32 248, %v856_v1  ;;  %v896_v17 = vadd.s32 80, %v856_v1  ;;  %p812_p13 = por %p811_p12, %p810_p11 }
  0x21   :  { %v884_v15 = vrot.slane %v36_v6, %v82_v11  ;;  %v899_v18 = vadd.s32 240, %v856_v1  ;;  %v905_v19 = vadd.s32 232, %v856_v1  ;;  %v911_v20 = vadd.s32 72, %v856_v1 }
  0x22   :  { %vm130_vm0 = vcmp.eq.s32.totalorder %v864_v8, %v53_v4  ;;  %vm129_vm1 = vcmp.eq.s32.totalorder %v862_v7, %v53_v4  ;;  %vm127_vm2 = vcmp.eq.s32.totalorder %v864_v8, %v52_v5  ;;  %vm126_vm3 = vcmp.eq.s32.totalorder %v862_v7, %v52_v5  ;;  %p813_p0 = pnand %p812_p13, %p806_p10 }
  0x23   :  { %630 = vmatprep.subr.msk.mxu0 %vm130_vm0, %v833_v13  ;;  %vm124_vm4 = vcmp.eq.s32.totalorder %v864_v8, %v867_v9  ;;  %vm123_vm5 = vcmp.eq.s32.totalorder %v862_v7, %v867_v9  ;;  %vm121_vm6 = vcmp.eq.s32.totalorder %v864_v8, %v874_v12  ;;  %vm120_vm7 = vcmp.eq.s32.totalorder %v862_v7, %v874_v12 }
  0x24   :  { %631 = vmatpush1.msk.msra.mxu0 %vm129_vm1, %v833_v13  ;;  %vm118_vm8 = vcmp.eq.s32.totalorder %v864_v8, %v882_v14  ;;  %vm117_vm9 = vcmp.eq.s32.totalorder %v862_v7, %v882_v14  ;;  %vm179_vm10 = vcmp.eq.s32.totalorder %v884_v15, %v890_v16  ;;  %vm131_vm11 = vcmp.eq.s32.totalorder %v884_v15, %v53_v4 }
  0x25   :  { %632 = vmatprep.subr.msk.mxu0 %vm127_vm2, %v833_v13  ;;  %vm115_vm12 = vcmp.eq.s32.totalorder %v864_v8, %v896_v17  ;;  %v923_v21 = vadd.s32 64, %v856_v1  ;;  %726 = vmatprep.subr.msk.mxu1 %vm179_vm10, %v833_v13  ;;  %vm176_vm13 = vcmp.eq.s32.totalorder %v884_v15, %v899_v18  ;;  %v929_v22 = vadd.s32 224, %v856_v1 }
  0x26   :  { %633 = vmatpush1.msk.msra.mxu0 %vm126_vm3, %v833_v13  ;;  %vm114_vm14 = vcmp.eq.s32.totalorder %v862_v7, %v896_v17  ;;  %727 = vmatpush3.msk.msra.mxu1 %vm131_vm11, %v833_v13  ;;  %vm128_vm15 = vcmp.eq.s32.totalorder %v884_v15, %v52_v5  ;;  %vm173_vm0 = vcmp.eq.s32.totalorder %v884_v15, %v905_v19  ;;  %v939_v23 = vadd.s32 216, %v856_v1 }
  0x27   :  { %634 = vmatprep.subr.msk.mxu0 %vm124_vm4, %v833_v13  ;;  %vm112_vm1 = vcmp.eq.s32.totalorder %v864_v8, %v911_v20  ;;  %v945_v24 = vadd.s32 56, %v856_v1  ;;  %728 = vmatprep.subr.msk.mxu1 %vm176_vm13, %v833_v13  ;;  %vm125_vm2 = vcmp.eq.s32.totalorder %v884_v15, %v867_v9  ;;  %vm111_vm3 = vcmp.eq.s32.totalorder %v862_v7, %v911_v20 }
  0x28   :  { %635 = vmatpush1.msk.msra.mxu0 %vm123_vm5, %v833_v13  ;;  %729 = vmatpush3.msk.msra.mxu1 %vm128_vm15, %v833_v13  ;;  %vm170_vm4 = vcmp.eq.s32.totalorder %v884_v15, %v929_v22  ;;  %v960_v25 = vadd.s32 208, %v856_v1  ;;  %vm109_vm5 = vcmp.eq.s32.totalorder %v864_v8, %v923_v21  ;;  %v966_v26 = vadd.s32 48, %v856_v1 }
  0x29   :  { %636 = vmatprep.subr.msk.mxu0 %vm121_vm6, %v833_v13  ;;  %730 = vmatprep.subr.msk.mxu1 %vm173_vm0, %v833_v13  ;;  %vm122_vm6 = vcmp.eq.s32.totalorder %v884_v15, %v874_v12  ;;  %v978_v27 = vadd.s32 200, %v856_v1  ;;  %v984_v28 = vadd.s32 40, %v856_v1  ;;  %vm119_vm10 = vcmp.eq.s32.totalorder %v884_v15, %v882_v14 }
  0x2a   :  { %637 = vmatpush1.msk.msra.mxu0 %vm120_vm7, %v833_v13  ;;  %vm108_vm7 = vcmp.eq.s32.totalorder %v862_v7, %v923_v21  ;;  %731 = vmatpush3.msk.msra.mxu1 %vm125_vm2, %v833_v13  ;;  %vm105_vm11 = vcmp.eq.s32.totalorder %v862_v7, %v945_v24  ;;  %v996_v29 = vadd.s32 192, %v856_v1  ;;  %vm103_vm13 = vcmp.eq.s32.totalorder %v864_v8, %v966_v26 }
  0x2b   :  { %638 = vmatprep.subr.msk.mxu0 %vm118_vm8, %v833_v13  ;;  %vm167_vm8 = vcmp.eq.s32.totalorder %v884_v15, %v939_v23  ;;  %732 = vmatprep.subr.msk.mxu1 %vm170_vm4, %v833_v13  ;;  %v1002_v30 = vadd.s32 32, %v856_v1  ;;  %vm102_vm15 = vcmp.eq.s32.totalorder %v862_v7, %v966_v26  ;;  %vm161_vm0 = vcmp.eq.s32.totalorder %v884_v15, %v978_v27 }
  0x2c   :  { %639 = vmatpush1.msk.msra.mxu0 %vm117_vm9, %v833_v13  ;;  %vm106_vm9 = vcmp.eq.s32.totalorder %v864_v8, %v945_v24  ;;  %733 = vmatpush3.msk.msra.mxu1 %vm122_vm6, %v833_v13  ;;  %v1014_v31 = vadd.s32 184, %v856_v1  ;;  %v1020_v32 = vadd.s32 24, %v856_v1  ;;  %vm113_vm2 = vcmp.eq.s32.totalorder %v884_v15, %v911_v20 }
  0x2d   :  { %640 = vmatprep.subr.msk.mxu0 %vm115_vm12, %v833_v13  ;;  %vm164_vm12 = vcmp.eq.s32.totalorder %v884_v15, %v960_v25  ;;  %734 = vmatprep.subr.msk.mxu1 %vm167_vm8, %v833_v13  ;;  %vm158_vm4 = vcmp.eq.s32.totalorder %v884_v15, %v996_v29  ;;  %v1032_v33 = vadd.s32 176, %v856_v1  ;;  %v1038_v34 = vadd.s32 16, %v856_v1 }
  0x2e   :  { %641 = vmatpush1.msk.msra.mxu0 %vm114_vm14, %v833_v13  ;;  %vm116_vm14 = vcmp.eq.s32.totalorder %v884_v15, %v896_v17  ;;  %735 = vmatpush3.msk.msra.mxu1 %vm119_vm10, %v833_v13  ;;  %vm110_vm6 = vcmp.eq.s32.totalorder %v884_v15, %v923_v21  ;;  %vm155_vm8 = vcmp.eq.s32.totalorder %v884_v15, %v1014_v31  ;;  %v1050_v35 = vadd.s32 168, %v856_v1 }
  0x2f   :  { %642 = vmatprep.subr.msk.mxu0 %vm112_vm1, %v833_v13  ;;  %vm100_vm1 = vcmp.eq.s32.totalorder %v864_v8, %v984_v28  ;;  %736 = vmatprep.subr.msk.mxu1 %vm164_vm12, %v833_v13  ;;  %v1056_v36 = vadd.s32 8, %v856_v1  ;;  %vm107_vm10 = vcmp.eq.s32.totalorder %v884_v15, %v945_v24  ;;  %vm152_vm12 = vcmp.eq.s32.totalorder %v884_v15, %v1032_v33 }
  0x30   :  { %643 = vmatpush1.msk.msra.mxu0 %vm111_vm3, %v833_v13  ;;  %vm99_vm3 = vcmp.eq.s32.totalorder %v862_v7, %v984_v28  ;;  %737 = vmatpush3.msk.msra.mxu1 %vm116_vm14, %v833_v13  ;;  %v1068_v37 = vadd.s32 160, %v856_v1  ;;  %vm104_vm14 = vcmp.eq.s32.totalorder %v884_v15, %v966_v26  ;;  %v1083_v38 = vadd.s32 152, %v856_v1 }
  0x31   :  { %644 = vmatprep.subr.msk.mxu0 %vm109_vm5, %v833_v13  ;;  %vm97_vm5 = vcmp.eq.s32.totalorder %v864_v8, %v1002_v30  ;;  %738 = vmatprep.subr.msk.mxu1 %vm161_vm0, %v833_v13  ;;  %vm149_vm0 = vcmp.eq.s32.totalorder %v884_v15, %v1050_v35  ;;  %v1098_v39 = vadd.s32 144, %v856_v1  ;;  %v1113_v40 = vadd.s32 136, %v856_v1 }
  0x32   :  { %645 = vmatpush1.msk.msra.mxu0 %vm108_vm7, %v833_v13  ;;  %vm96_vm7 = vcmp.eq.s32.totalorder %v862_v7, %v1002_v30  ;;  %739 = vmatpush3.msk.msra.mxu1 %vm113_vm2, %v833_v13  ;;  %vm101_vm2 = vcmp.eq.s32.totalorder %v884_v15, %v984_v28  ;;  %v1128_v41 = vadd.s32 128, %v856_v1 }
  0x33   :  { %646 = vmatprep.subr.msk.mxu0 %vm106_vm9, %v833_v13  ;;  %vm94_vm9 = vcmp.eq.s32.totalorder %v864_v8, %v1020_v32  ;;  %740 = vmatprep.subr.msk.mxu1 %vm158_vm4, %v833_v13  ;;  %vm146_vm4 = vcmp.eq.s32.totalorder %v884_v15, %v1068_v37 }
  0x34   :  { %647 = vmatpush1.msk.msra.mxu0 %vm105_vm11, %v833_v13  ;;  %vm93_vm11 = vcmp.eq.s32.totalorder %v862_v7, %v1020_v32  ;;  %741 = vmatpush3.msk.msra.mxu1 %vm110_vm6, %v833_v13  ;;  %vm98_vm6 = vcmp.eq.s32.totalorder %v884_v15, %v1002_v30 }
  0x35   :  { %648 = vmatprep.subr.msk.mxu0 %vm103_vm13, %v833_v13  ;;  %vm91_vm13 = vcmp.eq.s32.totalorder %v864_v8, %v1038_v34  ;;  %742 = vmatprep.subr.msk.mxu1 %vm155_vm8, %v833_v13  ;;  %vm143_vm8 = vcmp.eq.s32.totalorder %v884_v15, %v1083_v38 }
  0x36   :  { %649 = vmatpush1.msk.msra.mxu0 %vm102_vm15, %v833_v13  ;;  %vm90_vm15 = vcmp.eq.s32.totalorder %v862_v7, %v1038_v34  ;;  %743 = vmatpush3.msk.msra.mxu1 %vm107_vm10, %v833_v13  ;;  %vm95_vm10 = vcmp.eq.s32.totalorder %v884_v15, %v1020_v32 }
  0x37   :  { %650 = vmatprep.subr.msk.mxu0 %vm100_vm1, %v833_v13  ;;  %vm88_vm1 = vcmp.eq.s32.totalorder %v864_v8, %v1056_v36  ;;  %744 = vmatprep.subr.msk.mxu1 %vm152_vm12, %v833_v13  ;;  %vm140_vm12 = vcmp.eq.s32.totalorder %v884_v15, %v1098_v39 }
  0x38   :  { %651 = vmatpush1.msk.msra.mxu0 %vm99_vm3, %v833_v13  ;;  %vm87_vm3 = vcmp.eq.s32.totalorder %v862_v7, %v1056_v36  ;;  %745 = vmatpush3.msk.msra.mxu1 %vm104_vm14, %v833_v13  ;;  %vm92_vm14 = vcmp.eq.s32.totalorder %v884_v15, %v1038_v34 }
  0x39   :  { %652 = vmatprep.subr.msk.mxu0 %vm97_vm5, %v833_v13  ;;  %vm85_vm5 = vcmp.eq.s32.totalorder %v864_v8, %v856_v1  ;;  %746 = vmatprep.subr.msk.mxu1 %vm149_vm0, %v833_v13  ;;  %vm137_vm0 = vcmp.eq.s32.totalorder %v884_v15, %v1113_v40 }
  0x3a   :  { %653 = vmatpush1.msk.msra.mxu0 %vm96_vm7, %v833_v13  ;;  %vm84_vm7 = vcmp.eq.s32.totalorder %v862_v7, %v856_v1  ;;  %747 = vmatpush3.msk.msra.mxu1 %vm101_vm2, %v833_v13  ;;  %vm89_vm2 = vcmp.eq.s32.totalorder %v884_v15, %v1056_v36 }
  0x3b   :  { %654 = vmatprep.subr.msk.mxu0 %vm94_vm9, %v833_v13  ;;  %vm178_vm9 = vcmp.eq.s32.totalorder %v864_v8, %v890_v16  ;;  %748 = vmatprep.subr.msk.mxu1 %vm146_vm4, %v833_v13  ;;  %vm134_vm4 = vcmp.eq.s32.totalorder %v884_v15, %v1128_v41 }
  0x3c   :  { %655 = vmatpush1.msk.msra.mxu0 %vm93_vm11, %v833_v13  ;;  %vm177_vm11 = vcmp.eq.s32.totalorder %v862_v7, %v890_v16  ;;  %749 = vmatpush3.msk.msra.mxu1 %vm98_vm6, %v833_v13  ;;  %vm86_vm6 = vcmp.eq.s32.totalorder %v884_v15, %v856_v1 }
  0x3d   :  { %656 = vmatprep.subr.msk.mxu0 %vm91_vm13, %v833_v13  ;;  %vm175_vm13 = vcmp.eq.s32.totalorder %v864_v8, %v899_v18  ;;  %750 = vmatprep.subr.msk.mxu1 %vm143_vm8, %v833_v13  ;;  %vm166_vm8 = vcmp.eq.s32.totalorder %v864_v8, %v939_v23 }
  0x3e   :  { %657 = vmatpush1.msk.msra.mxu0 %vm90_vm15, %v833_v13  ;;  %vm174_vm15 = vcmp.eq.s32.totalorder %v862_v7, %v899_v18  ;;  %751 = vmatpush3.msk.msra.mxu1 %vm95_vm10, %v833_v13  ;;  %vm163_vm10 = vcmp.eq.s32.totalorder %v864_v8, %v960_v25 }
  0x3f   :  { %658 = vmatprep.subr.msk.mxu0 %vm88_vm1, %v833_v13  ;;  %vm172_vm1 = vcmp.eq.s32.totalorder %v864_v8, %v905_v19  ;;  %752 = vmatprep.subr.msk.mxu1 %vm140_vm12, %v833_v13  ;;  %vm160_vm12 = vcmp.eq.s32.totalorder %v864_v8, %v978_v27 }
  0x40   :  { %659 = vmatpush1.msk.msra.mxu0 %vm87_vm3, %v833_v13  ;;  %vm171_vm3 = vcmp.eq.s32.totalorder %v862_v7, %v905_v19  ;;  %753 = vmatpush3.msk.msra.mxu1 %vm92_vm14, %v833_v13  ;;  %vm157_vm14 = vcmp.eq.s32.totalorder %v864_v8, %v996_v29 }
  0x41   :  { %660 = vmatprep.subr.msk.mxu0 %vm85_vm5, %v833_v13  ;;  %vm169_vm5 = vcmp.eq.s32.totalorder %v864_v8, %v929_v22  ;;  %754 = vmatprep.subr.msk.mxu1 %vm137_vm0, %v833_v13  ;;  %vm154_vm0 = vcmp.eq.s32.totalorder %v864_v8, %v1014_v31 }
  0x42   :  { %661 = vmatpush1.msk.msra.mxu0 %vm84_vm7, %v833_v13  ;;  %vm168_vm7 = vcmp.eq.s32.totalorder %v862_v7, %v929_v22  ;;  %755 = vmatpush3.msk.msra.mxu1 %vm89_vm2, %v833_v13  ;;  %vm151_vm2 = vcmp.eq.s32.totalorder %v864_v8, %v1032_v33 }
  0x43   :  { %662 = vmatprep.subr.msk.mxu0 %vm178_vm9, %v833_v13  ;;  %756 = vmatprep.subr.msk.mxu1 %vm134_vm4, %v833_v13  ;;  %vm165_vm9 = vcmp.eq.s32.totalorder %v862_v7, %v939_v23  ;;  %vm148_vm4 = vcmp.eq.s32.totalorder %v864_v8, %v1050_v35 }
  0x44   :  { %663 = vmatpush2.msk.msra.mxu0 %vm177_vm11, %v833_v13  ;;  %757 = vmatpush3.msk.msra.mxu1 %vm86_vm6, %v833_v13  ;;  %vm162_vm11 = vcmp.eq.s32.totalorder %v862_v7, %v960_v25  ;;  %vm145_vm6 = vcmp.eq.s32.totalorder %v864_v8, %v1068_v37 }
  0x45   :  { %664 = vmatprep.subr.msk.mxu0 %vm175_vm13, %v833_v13  ;;  %510 = vmatmul.mubr.f32.vlgmr.msra.gmra.mxu1 %v372_v42  ;;  %vm159_vm13 = vcmp.eq.s32.totalorder %v862_v7, %v978_v27 }
  0x46   :  { %665 = vmatpush2.msk.msra.mxu0 %vm174_vm15, %v833_v13  ;;  %vm156_vm15 = vcmp.eq.s32.totalorder %v862_v7, %v996_v29 }
  0x47   :  { %666 = vmatprep.subr.msk.mxu0 %vm172_vm1, %v833_v13  ;;  %vm153_vm1 = vcmp.eq.s32.totalorder %v862_v7, %v1014_v31 }
  0x48   :  { %667 = vmatpush2.msk.msra.mxu0 %vm171_vm3, %v833_v13  ;;  %vm150_vm3 = vcmp.eq.s32.totalorder %v862_v7, %v1032_v33 }
  0x49   :  { %668 = vmatprep.subr.msk.mxu0 %vm169_vm5, %v833_v13  ;;  %vm147_vm5 = vcmp.eq.s32.totalorder %v862_v7, %v1050_v35 }
  0x4a   :  { %669 = vmatpush2.msk.msra.mxu0 %vm168_vm7, %v833_v13  ;;  %vm144_vm7 = vcmp.eq.s32.totalorder %v862_v7, %v1068_v37 }
  0x4b   :  { %670 = vmatprep.subr.msk.mxu0 %vm166_vm8, %v833_v13  ;;  %vm142_vm8 = vcmp.eq.s32.totalorder %v864_v8, %v1083_v38 }
  0x4c   :  { %671 = vmatpush2.msk.msra.mxu0 %vm165_vm9, %v833_v13  ;;  %vm141_vm9 = vcmp.eq.s32.totalorder %v862_v7, %v1083_v38 }
  0x4d   :  { %672 = vmatprep.subr.msk.mxu0 %vm163_vm10, %v833_v13  ;;  %vm139_vm10 = vcmp.eq.s32.totalorder %v864_v8, %v1098_v39 }
  0x4e   :  { %673 = vmatpush2.msk.msra.mxu0 %vm162_vm11, %v833_v13  ;;  %vm138_vm11 = vcmp.eq.s32.totalorder %v862_v7, %v1098_v39 }
  0x4f   :  { %674 = vmatprep.subr.msk.mxu0 %vm160_vm12, %v833_v13  ;;  %vm136_vm12 = vcmp.eq.s32.totalorder %v864_v8, %v1113_v40 }
  0x50   :  { %675 = vmatpush2.msk.msra.mxu0 %vm159_vm13, %v833_v13  ;;  %vm135_vm13 = vcmp.eq.s32.totalorder %v862_v7, %v1113_v40 }
  0x51   :  { %676 = vmatprep.subr.msk.mxu0 %vm157_vm14, %v833_v13  ;;  %vm133_vm14 = vcmp.eq.s32.totalorder %v864_v8, %v1128_v41 }
  0x52   :  { %677 = vmatpush2.msk.msra.mxu0 %vm156_vm15, %v833_v13  ;;  %vm132_vm15 = vcmp.eq.s32.totalorder %v862_v7, %v1128_v41 }
  0x53   :  { %678 = vmatprep.subr.msk.mxu0 %vm154_vm0, %v833_v13 }
  0x54   :  { %679 = vmatpush2.msk.msra.mxu0 %vm153_vm1, %v833_v13 }
  0x55   :  { %680 = vmatprep.subr.msk.mxu0 %vm151_vm2, %v833_v13 }
  0x56   :  { %681 = vmatpush2.msk.msra.mxu0 %vm150_vm3, %v833_v13 }
  0x57   :  { %682 = vmatprep.subr.msk.mxu0 %vm148_vm4, %v833_v13 }
  0x58   :  { %683 = vmatpush2.msk.msra.mxu0 %vm147_vm5, %v833_v13 }
  0x59   :  { %684 = vmatprep.subr.msk.mxu0 %vm145_vm6, %v833_v13 }
  0x5a   :  { %685 = vmatpush2.msk.msra.mxu0 %vm144_vm7, %v833_v13 }
  0x5b   :  { %686 = vmatprep.subr.msk.mxu0 %vm142_vm8, %v833_v13 }
  0x5c   :  { %687 = vmatpush2.msk.msra.mxu0 %vm141_vm9, %v833_v13 }
  0x5d   :  { %688 = vmatprep.subr.msk.mxu0 %vm139_vm10, %v833_v13 }
  0x5e   :  { %689 = vmatpush2.msk.msra.mxu0 %vm138_vm11, %v833_v13 }
  0x5f   :  { %690 = vmatprep.subr.msk.mxu0 %vm136_vm12, %v833_v13 }
  0x60   :  { %691 = vmatpush2.msk.msra.mxu0 %vm135_vm13, %v833_v13 }
  0x61   :  { %692 = vmatprep.subr.msk.mxu0 %vm133_vm14, %v833_v13 }
  0x62   :  { %693 = vmatpush2.msk.msra.mxu0 %vm132_vm15, %v833_v13 }
  0x63   :  { %439 = vmatmul.mubr.f32.vlgmr.msra.gmra.mxu0 %v372_v42 }
 0x105   :  { %v758_v43 = vpop.f32.mrf.mxu1 }
 0x107   :  { %v759_v44 = vpop.f32.mrf.mxu1 }
 0x108   :  { %v760_v45 = vadd.f32 %v759_v44, %v758_v43 }
 0x10a   :  { %517 = vst [vmem:[#allocation7 + $0x10] sm:$0xff] %v760_v45 }
 0x123   :  { %v440_v46 = vpop.f32.mrf.mxu0 }
 0x124   :  { %515 = vst [vmem:[#allocation7] sm:$0xff] %v440_v46 }
 0x125   :  { %v442_v47 = vpop.f32.mrf.mxu0 }
 0x126   :  { %516 = vst [vmem:[#allocation7 + $0x8] sm:$0xff] %v442_v47 }
 0x127   :  { %816 = shalt.err (!%p813_p0)
}
 0x128   :  { %527 = dma.vmem_to_hbm [thread:$0]  %s525_s1, 384, %s1246_s2, [#allocation4]  }
 0x129   :  { %829 = dma.done.wait [#allocation4], 384  }
 0x12a   :  { %830 = vsyncadd [#allocation4], 4294966912 }
 0x12b   :  { %531 = vsyncpa [#allocation3], 1 }
 0x12c   :  { %532 = vsyncpa [#allocation6], 1 }
 0x12d   :  { %533 = vsyncpa [#allocation4], 1 }

</bundles_post_ra>
